<compile_context>
chip_gen: v7x
topology: tpu7x:2x2x1
jax: 0.10.0
libtpu: 0.0.40
codegen_flags: <defaults>
</compile_context>

<pallas_src>
import math
import functools

import jax
import jax.numpy as jnp
from jax.experimental import pallas as pl
from jax.experimental.pallas import tpu as pltpu


def _sdpa_kernel(q_ref, kt_ref, v_ref, *rest, scale, has_mask, return_attn):
    """One grid step = one (batch, head, L_q-tile).

    q_ref    : (1, 1, TQ, Dk)   compute dtype (bf16 by default)
    kt_ref   : (1, 1, Dk, Lk)   K pre-transposed -> plain matmul, lane-dense Lk
    v_ref    : (1, 1, Lk, Dk)
    mask_ref : (1, 1, tq_m, lk_m) int8 keep-mask at its broadcast shape
    out_ref  : (1, 1, TQ, Dk)
    attn_ref : (1, 1, TQ, Lk)   (only when return_attn)
    """
    idx = 0
    mask_ref = None
    if has_mask:
        mask_ref = rest[idx]
        idx += 1
    out_ref = rest[idx]
    idx += 1
    attn_ref = rest[idx] if return_attn else None

    q = q_ref[0, 0]                                   # (TQ, Dk)
    kt = kt_ref[0, 0]                                 # (Dk, Lk)
    v = v_ref[0, 0]                                   # (Lk, Dk)

    # Fold 1/sqrt(d_k) into Q (TQ*Dk elems) instead of the scores (TQ*Lk).
    q = q * jnp.asarray(scale, q.dtype)

    # Plain 2-D MXU matmul, f32 accumulation.
    scores = jnp.dot(q, kt, preferred_element_type=jnp.float32)   # (TQ, Lk)

    if has_mask:
        keep = mask_ref[0, 0] != 0                    # broadcasts over TQ/Lk
        scores = jnp.where(keep, scores, jnp.float32(-1e9))  # == masked_fill

    # Numerically stable softmax; exact per-row divide so attn rows sum to 1
    # (attn is a user-visible output of the module).
    m = jnp.max(scores, axis=-1, keepdims=True)
    e = jnp.exp(scores - m)
    denom = jnp.sum(e, axis=-1, keepdims=True)        # (TQ, 1)
    attn = e * (jnp.float32(1.0) / denom)

    if return_attn:
        attn_ref[0, 0] = attn.astype(attn_ref.dtype)

    out = jnp.dot(attn.astype(v.dtype), v, preferred_element_type=jnp.float32)
    out_ref[0, 0] = out.astype(out_ref.dtype)


def scaled_dot_product_attention(Q, K, V, mask=None, *, return_attn=True,
                                 matmul_dtype="auto", block_q=None):
    """Pallas equivalent of the PyTorch ScaledDotProductAttention.forward."""
    squeeze_head = False
    if Q.ndim == 3:                                   # allow [B, L, d_k]
        Q, K, V = Q[:, None], K[:, None], V[:, None]
        squeeze_head = True
    assert Q.ndim == 4, "expected Q/K/V of shape [B, H, L, d_k] (or [B, L, d_k])"

    B, H, Lq, Dk = Q.shape
    Lk = K.shape[-2]
    out_dtype = Q.dtype
    scale = 1.0 / math.sqrt(Dk)

    # MXU operand dtype: bf16 by default for f32 inputs (f32 accumulation kept).
    if matmul_dtype == "auto":
        compute_dtype = jnp.bfloat16 if Q.dtype == jnp.float32 else Q.dtype
    elif matmul_dtype is None:
        compute_dtype = Q.dtype
    else:
        compute_dtype = matmul_dtype

    # Query tiling: 128-row tiles for long sequences (pad Lq up), single
    # full-extent tile for short ones.
    if block_q is not None:
        TQ = int(block_q)
    elif Lq >= 128:
        TQ = 128
    else:
        TQ = Lq
    Lq_p = ((Lq + TQ - 1) // TQ) * TQ
    pad_q = Lq_p - Lq

    Qc = Q.astype(compute_dtype)
    if pad_q:
        Qc = jnp.pad(Qc, ((0, 0), (0, 0), (0, pad_q), (0, 0)))
    # Pre-transpose K (fused with the dtype cast): plain matmul, lane-dense Lk.
    KT = jnp.swapaxes(K, -2, -1).astype(compute_dtype)          # [B, H, Dk, Lk]
    Vc = V.astype(compute_dtype)

    grid = (B, H, Lq_p // TQ)

    in_specs = [
        pl.BlockSpec((1, 1, TQ, Dk), lambda b, h, qi: (b, h, qi, 0)),
        pl.BlockSpec((1, 1, Dk, Lk), lambda b, h, qi: (b, h, 0, 0)),
        pl.BlockSpec((1, 1, Lk, Dk), lambda b, h, qi: (b, h, 0, 0)),
    ]
    args = [Qc, KT, Vc]

    has_mask = mask is not None
    tq_m = lk_m = 1
    if has_mask:
        # torch masked_fill semantics: right-aligned broadcasting of `mask == 0`
        # against [B, H, Lq, Lk].  Pass a 4-D mask for unambiguous batch/head dims.
        keep = (mask != 0).astype(jnp.int8)
        keep = jnp.reshape(keep, (1,) * (4 - keep.ndim) + keep.shape)
        Bm, Hm, Lqm, Lkm = keep.shape
        assert Bm in (1, B) and Hm in (1, H) and Lqm in (1, Lq) and Lkm in (1, Lk), (
            "mask must be right-aligned broadcastable to [B, H, Lq, Lk] "
            f"(got {mask.shape} vs scores {(B, H, Lq, Lk)})")
        if Lqm > 1 and pad_q:
            keep = jnp.pad(keep, ((0, 0), (0, 0), (0, pad_q), (0, 0)),
                           constant_values=1)
        tq_m = TQ if Lqm > 1 else 1
        lk_m = Lkm

        def mask_index_map(b, h, qi, _b=(Bm > 1), _h=(Hm > 1), _q=(Lqm > 1)):
            # Broadcast folded into the index_map: size-1 dims always map to 0,
            # so the mask is never materialized at [B, H, Lq, Lk] in HBM.
            return (b if _b else 0, h if _h else 0, qi if _q else 0, 0)

        in_specs.append(pl.BlockSpec((1, 1, tq_m, lk_m), mask_index_map))
        args.append(keep)

    out_specs = [pl.BlockSpec((1, 1, TQ, Dk), lambda b, h, qi: (b, h, qi, 0))]
    out_shape = [jax.ShapeDtypeStruct((B, H, Lq_p, Dk), out_dtype)]
    if return_attn:
        out_specs.append(pl.BlockSpec((1, 1, TQ, Lk), lambda b, h, qi: (b, h, qi, 0)))
        out_shape.append(jax.ShapeDtypeStruct((B, H, Lq_p, Lk), out_dtype))

    # Explicit scoped-VMEM sizing: double-buffered blocks + f32 intermediates,
    # with 2x headroom, clamped to the 64 MiB v7x physical budget.
    cb = jnp.dtype(compute_dtype).itemsize
    ob = jnp.dtype(out_dtype).itemsize
    est = 2 * (TQ * Dk + Dk * Lk + Lk * Dk) * cb          # q, kT, v (x2 buffers)
    est += 2 * TQ * Dk * ob                               # out
    if has_mask:
        est += 2 * tq_m * lk_m                            # int8 mask tile
    if return_attn:
        est += 2 * TQ * Lk * ob                           # attn tile
    est += 6 * TQ * Lk * 4                                # f32 scores/e/attn temps
    vmem_limit = int(min(max(2 * est, 16 << 20), 64 << 20))

    kern = functools.partial(_sdpa_kernel, scale=scale, has_mask=has_mask,
                             return_attn=return_attn)

    results = pl.pallas_call(
        kern,
        out_shape=out_shape,
        grid_spec=pltpu.PrefetchScalarGridSpec(
            num_scalar_prefetch=0,
            grid=grid,
            in_specs=in_specs,
            out_specs=out_specs,
        ),
        compiler_params=pltpu.CompilerParams(
            # B/H parallel (megacore splits on disjoint K/V streams),
            # query-tile axis arbitrary.
            dimension_semantics=("parallel", "parallel", "arbitrary"),
            vmem_limit_bytes=vmem_limit),
    )(*args)

    if return_attn:
        out, attn = results
    else:
        out, attn = results[0], None

    if pad_q:
        out = out[:, :, :Lq]
        if attn is not None:
            attn = attn[:, :, :Lq]
    if squeeze_head:
        out = out[:, 0]
        if attn is not None:
            attn = attn[:, 0]
    return (out, attn) if return_attn else out


def _reference(Q, K, V, mask=None):
    """Pure-JAX reference with the exact PyTorch module semantics (f32)."""
    Dk = Q.shape[-1]
    scores = jnp.einsum("bhqd,bhkd->bhqk", Q, K,
                        precision=jax.lax.Precision.HIGHEST) / math.sqrt(Dk)
    if mask is not None:
        m = jnp.reshape(mask, (1,) * (4 - mask.ndim) + mask.shape)
        scores = jnp.where(m == 0, jnp.float32(-1e9), scores)
    attn = jax.nn.softmax(scores, axis=-1)
    out = jnp.einsum("bhqk,bhkd->bhqd", attn, V,
                     precision=jax.lax.Precision.HIGHEST)
    return out, attn


if __name__ == "__main__":
    key = jax.random.PRNGKey(0)

    # ---- Test 1: small shapes, causal mask, f32 MXU path (tight check) ------
    B, H, L, Dk = 2, 4, 8, 16
    kq, kk, kv, k2 = jax.random.split(key, 4)
    Q = jax.random.normal(kq, (B, H, L, Dk), dtype=jnp.float32)
    K = jax.random.normal(kk, (B, H, L, Dk), dtype=jnp.float32)
    V = jax.random.normal(kv, (B, H, L, Dk), dtype=jnp.float32)
    mask = jnp.tril(jnp.ones((L, L), jnp.float32))[None, None]   # (1,1,L,L)

    out_ref, attn_ref = _reference(Q, K, V, mask)

    out32, attn32 = scaled_dot_product_attention(Q, K, V, mask, matmul_dtype=None)
    out32, attn32 = jax.block_until_ready((out32, attn32))
    assert out32.shape == (B, H, L, Dk) and attn32.shape == (B, H, L, L)
    assert float(jnp.max(jnp.abs(attn32 - attn_ref))) < 1e-3
    assert float(jnp.max(jnp.abs(out32 - out_ref))) < 1e-3

    # ---- Test 2: same shapes, default bf16 MXU operands (loose check) -------
    out, attn = scaled_dot_product_attention(Q, K, V, mask)
    out, attn = jax.block_until_ready((out, attn))
    masked_attn = jnp.where(mask == 0, attn, 0.0)
    assert float(jnp.max(jnp.abs(masked_attn))) < 1e-6            # masked -> ~0
    assert float(jnp.max(jnp.abs(jnp.sum(attn, -1) - 1.0))) < 1e-3  # rows sum to 1
    assert float(jnp.max(jnp.abs(attn - attn_ref))) < 5e-2
    assert float(jnp.max(jnp.abs(out - out_ref))) < 1e-1

    # ---- Test 3: Lq not a multiple of 128 (padding path), 2-D mask, Lq!=Lk --
    B2, H2, Lq2, Lk2, Dk2 = 1, 2, 136, 40, 16
    kq2, kk2, kv2 = jax.random.split(k2, 3)
    Q2 = jax.random.normal(kq2, (B2, H2, Lq2, Dk2), dtype=jnp.float32)
    K2 = jax.random.normal(kk2, (B2, H2, Lk2, Dk2), dtype=jnp.float32)
    V2 = jax.random.normal(kv2, (B2, H2, Lk2, Dk2), dtype=jnp.float32)
    mask2 = (jnp.arange(Lk2)[None, :] <=
             (jnp.arange(Lq2)[:, None] % Lk2)).astype(jnp.float32)  # (Lq2, Lk2)

    out2_ref, attn2_ref = _reference(Q2, K2, V2, mask2)
    out2, attn2 = scaled_dot_product_attention(Q2, K2, V2, mask2)
    out2, attn2 = jax.block_until_ready((out2, attn2))
    assert out2.shape == (B2, H2, Lq2, Dk2) and attn2.shape == (B2, H2, Lq2, Lk2)
    assert float(jnp.max(jnp.abs(attn2 - attn2_ref))) < 5e-2
    assert float(jnp.max(jnp.abs(out2 - out2_ref))) < 1e-1

    # ---- Test 4: no mask, return_attn=False fast path ------------------------
    out3 = scaled_dot_product_attention(Q, K, V, return_attn=False)
    out3 = jax.block_until_ready(out3)
    out3_ref, _ = _reference(Q, K, V)
    assert out3.shape == (B, H, L, Dk)
    assert float(jnp.max(jnp.abs(out3 - out3_ref))) < 1e-1

    print("KERNEL_OK")
</pallas_src>

<mosaic_0001>
module attributes {stable_mosaic.version = 11 : i64} {
  func.func @_sdpa_kernel(%arg0: i32, %arg1: i32, %arg2: i32, %arg3: memref<1x1x8x16xf32, #tpu.memory_space<vmem>>, %arg4: memref<1x1x16x8xf32, #tpu.memory_space<vmem>>, %arg5: memref<1x1x8x16xf32, #tpu.memory_space<vmem>>, %arg6: memref<1x1x8x8xi8, #tpu.memory_space<vmem>>, %arg7: memref<1x1x8x16xf32, #tpu.memory_space<vmem>>, %arg8: memref<1x1x8x8xf32, #tpu.memory_space<vmem>>) attributes {dimension_semantics = [#tpu.dimension_semantics<parallel>, #tpu.dimension_semantics<parallel>, #tpu.dimension_semantics<arbitrary>], iteration_bounds = array<i64: 2, 4, 1>, scalar_prefetch = 0 : i64, scratch_operands = 0 : i64, tpu.core_type = #tpu.core_type<tc>, window_params = [{transform_indices = @transform_0, window_bounds = array<i64: 1, 1, 8, 16>}, {transform_indices = @transform_1, window_bounds = array<i64: 1, 1, 16, 8>}, {transform_indices = @transform_2, window_bounds = array<i64: 1, 1, 8, 16>}, {transform_indices = @transform_3, window_bounds = array<i64: 1, 1, 8, 8>}, {transform_indices = @transform_4, window_bounds = array<i64: 1, 1, 8, 16>}, {transform_indices = @transform_5, window_bounds = array<i64: 1, 1, 8, 8>}]} {
    %c0 = arith.constant 0 : index
    %c0_0 = arith.constant 0 : index
    %c0_1 = arith.constant 0 : index
    %c0_2 = arith.constant 0 : index
    %0 = vector.load %arg3[%c0, %c0_0, %c0_1, %c0_2] : memref<1x1x8x16xf32, #tpu.memory_space<vmem>>, vector<1x1x8x16xf32>
    %1 = vector.shape_cast %0 : vector<1x1x8x16xf32> to vector<8x16xf32>
    %c0_3 = arith.constant 0 : index
    %c0_4 = arith.constant 0 : index
    %c0_5 = arith.constant 0 : index
    %c0_6 = arith.constant 0 : index
    %2 = vector.load %arg4[%c0_3, %c0_4, %c0_5, %c0_6] : memref<1x1x16x8xf32, #tpu.memory_space<vmem>>, vector<1x1x16x8xf32>
    %3 = vector.shape_cast %2 : vector<1x1x16x8xf32> to vector<16x8xf32>
    %c0_7 = arith.constant 0 : index
    %c0_8 = arith.constant 0 : index
    %c0_9 = arith.constant 0 : index
    %c0_10 = arith.constant 0 : index
    %4 = vector.load %arg5[%c0_7, %c0_8, %c0_9, %c0_10] : memref<1x1x8x16xf32, #tpu.memory_space<vmem>>, vector<1x1x8x16xf32>
    %5 = vector.shape_cast %4 : vector<1x1x8x16xf32> to vector<8x16xf32>
    %cst = arith.constant 2.500000e-01 : f32
    %6 = vector.broadcast %cst : f32 to vector<8x16xf32>
    %7 = arith.mulf %1, %6 : vector<8x16xf32>
    %cst_11 = arith.constant dense<0.000000e+00> : vector<8x8xf32>
    %8 = tpu.matmul %7, %3, %cst_11 {dimension_numbers = #tpu.dot_dimension_numbers<[1], [0], [0], [1], [0, 0, 1, 1], [], []>} : vector<8x16xf32>, vector<16x8xf32>, vector<8x8xf32> -> vector<8x8xf32>
    %c0_12 = arith.constant 0 : index
    %c0_13 = arith.constant 0 : index
    %c0_14 = arith.constant 0 : index
    %c0_15 = arith.constant 0 : index
    %9 = vector.load %arg6[%c0_12, %c0_13, %c0_14, %c0_15] : memref<1x1x8x8xi8, #tpu.memory_space<vmem>>, vector<1x1x8x8xi8>
    %10 = vector.shape_cast %9 : vector<1x1x8x8xi8> to vector<8x8xi8>
    %c0_i8 = arith.constant 0 : i8
    %11 = vector.broadcast %c0_i8 : i8 to vector<8x8xi8>
    %12 = arith.cmpi ne, %10, %11 : vector<8x8xi8>
    %cst_16 = arith.constant -1.000000e+09 : f32
    %13 = vector.broadcast %cst_16 : f32 to vector<8x8xf32>
    %14 = arith.select %12, %8, %13 : vector<8x8xi1>, vector<8x8xf32>
    %cst_17 = arith.constant dense<0xFF800000> : vector<8xf32>
    %15 = vector.multi_reduction <maximumf>, %14, %cst_17 [1] : vector<8x8xf32> to vector<8xf32>
    %16 = vector.shape_cast %15 : vector<8xf32> to vector<8x1xf32>
    %17 = vector.broadcast %16 : vector<8x1xf32> to vector<8x8xf32>
    %18 = arith.subf %14, %17 : vector<8x8xf32>
    %19 = math.exp %18 : vector<8x8xf32>
    %cst_18 = arith.constant dense<0.000000e+00> : vector<8xf32>
    %20 = vector.multi_reduction <add>, %19, %cst_18 [1] : vector<8x8xf32> to vector<8xf32>
    %21 = vector.shape_cast %20 : vector<8xf32> to vector<8x1xf32>
    %cst_19 = arith.constant 1.000000e+00 : f32
    %22 = vector.broadcast %cst_19 : f32 to vector<8x1xf32>
    %23 = arith.divf %22, %21 : vector<8x1xf32>
    %24 = vector.broadcast %23 : vector<8x1xf32> to vector<8x8xf32>
    %25 = arith.mulf %19, %24 : vector<8x8xf32>
    %c0_20 = arith.constant 0 : index
    %c0_21 = arith.constant 0 : index
    %c0_22 = arith.constant 0 : index
    %c0_23 = arith.constant 0 : index
    %26 = vector.load %arg8[%c0_20, %c0_21, %c0_22, %c0_23] : memref<1x1x8x8xf32, #tpu.memory_space<vmem>>, vector<1x1x8x8xf32>
    %27 = vector.shape_cast %26 : vector<1x1x8x8xf32> to vector<8x8xf32>
    %28 = vector.shape_cast %25 : vector<8x8xf32> to vector<1x1x8x8xf32>
    tpu.vector_store %arg8[%c0_20, %c0_21, %c0_22, %c0_23], %28 {strides = array<i32>} : memref<1x1x8x8xf32, #tpu.memory_space<vmem>>, vector<1x1x8x8xf32>,
    %cst_24 = arith.constant dense<0.000000e+00> : vector<8x16xf32>
    %29 = tpu.matmul %25, %5, %cst_24 {dimension_numbers = #tpu.dot_dimension_numbers<[1], [0], [0], [1], [0, 0, 1, 1], [], []>} : vector<8x8xf32>, vector<8x16xf32>, vector<8x16xf32> -> vector<8x16xf32>
    %c0_25 = arith.constant 0 : index
    %c0_26 = arith.constant 0 : index
    %c0_27 = arith.constant 0 : index
    %c0_28 = arith.constant 0 : index
    %30 = vector.load %arg7[%c0_25, %c0_26, %c0_27, %c0_28] : memref<1x1x8x16xf32, #tpu.memory_space<vmem>>, vector<1x1x8x16xf32>
    %31 = vector.shape_cast %30 : vector<1x1x8x16xf32> to vector<8x16xf32>
    %32 = vector.shape_cast %29 : vector<8x16xf32> to vector<1x1x8x16xf32>
    tpu.vector_store %arg7[%c0_25, %c0_26, %c0_27, %c0_28], %32 {strides = array<i32>} : memref<1x1x8x16xf32, #tpu.memory_space<vmem>>, vector<1x1x8x16xf32>,
    return
  }
  func.func @transform_0(%arg0: i32, %arg1: i32, %arg2: i32) -> (i32, i32, i32, i32) {
    %c0_i32 = arith.constant 0 : i32
    %c0_i32_0 = arith.constant 0 : i32
    return %arg0, %arg1, %arg2, %c0_i32 : i32, i32, i32, i32
  }
  func.func @transform_1(%arg0: i32, %arg1: i32, %arg2: i32) -> (i32, i32, i32, i32) {
    %c0_i32 = arith.constant 0 : i32
    %c0_i32_0 = arith.constant 0 : i32
    %c0_i32_1 = arith.constant 0 : i32
    return %arg0, %arg1, %c0_i32, %c0_i32_0 : i32, i32, i32, i32
  }
  func.func @transform_2(%arg0: i32, %arg1: i32, %arg2: i32) -> (i32, i32, i32, i32) {
    %c0_i32 = arith.constant 0 : i32
    %c0_i32_0 = arith.constant 0 : i32
    %c0_i32_1 = arith.constant 0 : i32
    return %arg0, %arg1, %c0_i32, %c0_i32_0 : i32, i32, i32, i32
  }
  func.func @transform_3(%arg0: i32, %arg1: i32, %arg2: i32) -> (i32, i32, i32, i32) {
    %c0_i32 = arith.constant 0 : i32
    %c0_i32_0 = arith.constant 0 : i32
    %c0_i32_1 = arith.constant 0 : i32
    %c0_i32_2 = arith.constant 0 : i32
    return %c0_i32, %c0_i32_0, %arg2, %c0_i32_1 : i32, i32, i32, i32
  }
  func.func @transform_4(%arg0: i32, %arg1: i32, %arg2: i32) -> (i32, i32, i32, i32) {
    %c0_i32 = arith.constant 0 : i32
    %c0_i32_0 = arith.constant 0 : i32
    return %arg0, %arg1, %arg2, %c0_i32 : i32, i32, i32, i32
  }
  func.func @transform_5(%arg0: i32, %arg1: i32, %arg2: i32) -> (i32, i32, i32, i32) {
    %c0_i32 = arith.constant 0 : i32
    %c0_i32_0 = arith.constant 0 : i32
    return %arg0, %arg1, %arg2, %c0_i32 : i32, i32, i32, i32
  }
}

</mosaic_0001>

<bundles_post_ra>
// kernel: tpu_custom_call.1
= control target key start
LH: loop header
LB: loop body
LE: loop exit
PB: predicated region body
PF: predicated region fallthrough
CT: control target
= control target key end

     0   :  { %11 = vsyncpa [#allocation3], 0  ;;  %s1242_s0 = inlined_call_operand.vmem [shape: f32[2,4,8,16], index: 0, kind: input, shape index: {}]   ;;  %s1243_s1 = inlined_call_operand.vmem [shape: f32[2,4,16,8], index: 1, kind: input, shape index: {}]   ;;  %s1244_s2 = inlined_call_operand.vmem [shape: f32[2,4,8,16], index: 2, kind: input, shape index: {}]   ;;  %s1245_s3 = inlined_call_operand.vmem [shape: s8[1,1,8,8], index: 3, kind: input, shape index: {}]   ;;  %s1246_s4 = inlined_call_operand.hbm [shape: f32[2,4,8,16], index: 4, kind: output, shape index: {0}]   ;;  %s1247_s5 = inlined_call_operand.hbm [shape: f32[2,4,8,8], index: 5, kind: output, shape index: {1}]  }
   0x1   :  { %13 = vsyncpa [#allocation3 + $0x1], 0 }
   0x2   :  { %14 = vsyncpa [#allocation5], 0 }
   0x3   :  { %16 = vsyncpa [#allocation5 + $0x1], 0  ;;  %s1045_s18 = smov 0   ;;  %s1047_s19 = smov 0  }
   0x4   :  { %s1049_s20 = smov 0   ;;  %s1051_s21 = smov 0  }
   0x5   :  { %s1053_s22 = smov 0   ;;  %s1055_s23 = smov 0  }
   0x6   :  { %s1057_s24 = smov 0   ;;  %s1059_s25 = smov 0  }
   0x7 LB: > { %1251 = sst [smem:[#allocation8_spill]] %s1003_s24  ;;  %s752_s26 = sadd.s32 4294967295, %s1007_s25   ;;  %s1007_s25 = sphi %s1059_s25, %s22_s25   ;;  %s1003_s24 = sphi %s1057_s24, %s1258_s24   ;;  %s999_s23 = sphi %s1055_s23, %s1263_s23   ;;  %s995_s22 = sphi %s1053_s22, %s1256_s22   ;;  %s991_s21 = sphi %s1051_s21, %s1262_s21   ;;  %s987_s20 = sphi %s1049_s20, %s1261_s20   ;;  %s983_s19 = sphi %s1047_s19, %s1260_s19   ;;  %s979_s18 = sphi %s1045_s18, %s1259_s18  }
   0x8   : > { %s753_s27 = sadd.s32 4294967294, %s1007_s25   ;;  %s37_s28 = sadd.s32 1, %s999_s23 }
   0x9   : > { %p39_p0 = scmp.ge.s32.totalorder %s37_s28, 4  ;;  %s41_s29 = sadd.s32 1, %s1003_s24 }
   0xa   : > { %p174_p1 = scmp.ne.s32.totalorder %s987_s20, %s983_s19  ;;  %p175_p2 = scmp.eq.s32.totalorder %s752_s26, 7 }
   0xb   : > { %s1265_s28 = smov (%p39_p0, %s37_s28), 0  ;;  %s1267_s29 = smov (!%p39_p0, %s41_s29), %s1003_s24 }
   0xc   : > { %1252 = sst [smem:[#allocation9_spill]] %s1265_s28  ;;  %s158_s30 = ssub.s32 %s999_s23, %s1265_s28 }
   0xd   : > { %p1096_p3 = por %p175_p2, %p174_p1  ;;  %p43_p4 = scmp.ge.s32.totalorder %s1267_s29, 2 }
   0xe   : > { %p180_p5 = scmp.ne.s32.totalorder %s983_s19, %s979_s18  ;;  %p181_p6 = scmp.eq.s32.totalorder %s753_s27, 7 }
   0xf   : > { %p757_p7 = scmp.ge.s32.totalorder %s1007_s25, 1  ;;  %s1269_s29 = smov (%p43_p4, %s1267_s29), 0 }
  0x10   : > { %1254 = sst [smem:[#allocation10_spill]] %s1269_s29  ;;  %p1105_p8 = por %p181_p6, %p180_p5 }
  0x11   : > { %p273_p9 = scmp.lt.s32.totalorder %s1007_s25, 9  ;;  %s157_s8 = ssub.s32 %s1003_s24, %s1269_s29 }
  0x12   : > { %s164_s9 = sadd.s32 1, %s987_s20  ;;  %s159_s10 = sor.u32 %s158_s30, %s157_s8 }
  0x13   : > { %p274_p10 = pnand %p757_p7, %p273_p9  ;;  %p162_p11 = scmp.eq.s32.totalorder %s159_s10, 0 }
  0x14   : > { %p333_p12 = scmp.lt.s32.totalorder (!%p274_p10), %s995_s22, 1  ;;  %p335_p13 = scmp.lt.s32.totalorder (!%p274_p10), %s991_s21, 3  ;;  %v1009_v0 = vmov (!%p274_p10), 0.0|0.0   ;;  %vm1010_vm0 = vmmov (!%p274_p10), 0   ;;  %v1011_v1 = vmov (!%p274_p10), 0.0   ;;  %vm372_vm1 = vcmask (!%p274_p10), 130048  }
  0x15   : > { %s1114_s11 = scalar_select %p162_p11, %s987_s20, %s164_s9  }
  0x16   : > { %277 = sbr.rel (%p274_p10) target bundleno = 795 (0x31b), region = 36  ;;  %794 = vmatprep.subr.bf16.mxu0 (!%p274_p10), %v1009_v0  ;;  %786 = vmatprep.mubr.msk.f32.mxu0 (!%p274_p10), %vm1010_vm0, %v1011_v1  ;;  %v446_v7 = vld [vmem:[%s1245_s3] sm:$0x3] (!%p274_p10)  ;;  %v1012_v8 = vmov (!%p274_p10), 0   ;;  %vm452_vm4 = vcmask (!%p274_p10), 64512  }
  0x17   : > { %789 = vmatprep.subr.mxu1 (!%p274_p10), %v1011_v1  ;;  %791 = vmatprep.mubr.msk.f32.mxu1 (!%p274_p10), %vm1010_vm0, %v1011_v1  ;;  %vm447_vm2 = vnez (!%p274_p10), %v446_v7 }
  0x18   : > { %v448_v9 = vsel (!%p274_p10), %vm447_vm2, 16843009, %v1012_v8 }
  0x19   : > { %v449_v10 = vunpack.c.0.s8 (!%p274_p10), %v448_v9 }
  0x1b   : > { %vm450_vm3 = vcmp.ne.s32.totalorder (!%p274_p10), %v449_v10, 0 }
  0x1d   : > { %s334_s12 = scalar_select %p333_p12, %s995_s22, 1 }
  0x1e   : > { %s336_s13 = scalar_select %p335_p13, %s991_s21, 3 }
  0x1f   : > { %s760_s14 = sshll.u32 %s334_s12, 2  ;;  %s763_s15 = sshll.u32 %s334_s12, 3 }
  0x20   : > { %s1120_s16 = sadd.s32 %s760_s14, %s336_s13  ;;  %s762_s17 = sshll.u32 %s336_s13, 1 }
  0x21   : > { %s350_s26 = sadd.s32 %s763_s15, %s762_s17  ;;  %s761_s27 = sshll.u32 %s1120_s16, 3 }
  0x22   : > { %s764_s30 = sshll.u32 %s350_s26, 3  ;;  %s343_s10 = scalar_lea.vmem %s1242_s0, %s761_s27 }
  0x23   : > { %s352_s24 = scalar_lea.vmem %s1243_s1, %s764_s30  ;;  %v367_v2 = vld [vmem:[%s343_s10] sm:$0xff]  ;;  %s360_s29 = scalar_lea.vmem %s1244_s2, %s761_s27 }
  0x24   : > { %v368_v3 = vld [vmem:[%s352_s24] sm:$0xff]  ;;  %v369_v4 = vld [vmem:[%s352_s24 + $0x8] sm:$0xff]  ;;  %v371_v6 = vmul.f32 0.25, %v367_v2  ;;  %s1143_s14 = sand.u32 1, %s983_s19   ;;  %s771_s17 = sshll.u32 %s995_s22, 2 }
  0x25   : > { %v795_v5 = vpack.c.bf16 %v369_v4, %v368_v3  ;;  %v370_v20 = vld [vmem:[%s360_s29] sm:$0xff]  ;;  %s758_s15 = sshll.u32 %s1143_s14, 3  ;;  %s1152_s26 = sadd.s32 %s991_s21, %s771_s17 }
  0x26   : > { %790 = vmatpush3.msra.mxu1 %v370_v20  ;;  %s332_s16 = scalar_lea.vmem [#allocation4], %s758_s15  ;;  %s772_s27 = sshll.u32 %s1152_s26, 7 }
  0x27   : > { %796 = vmatpush3.bf16.msra.mxu0 %v795_v5  ;;  %s1160_s9 = scalar_lea.hbm %s1247_s5, %s772_s27  ;;  %s578_s10 = sshll.u32 %s332_s16, 4  ;;  %s579_s10 = int_to_ptr.vmem [resolvable:$true] %s578_s10 }
  0x28   : > { %s546_s12 = scalar_lea.sflag [#allocation5], %s1143_s14  ;;  %s881_s13 = scalar_lea.vmem %s579_s10, 128 }
  0x29   : > { %p882_p0 = scmp.ne.s32.totalorder %s579_s10, %s881_s13  ;;  %s1013_s22 = smov [#allocation4]  }
  0x2a   : > { %787 = vmatmul.mubr.msk.f32.vlgmr.msra.gmra.mrb[0].mxu0 %vm372_vm1, %v371_v6  ;;  %s885_s21 = sshll.u32 %s1013_s22, 4  ;;  %s886_s21 = int_to_ptr.vmem [resolvable:$false] %s885_s21 }
  0x2b   : > { %p883_p1 = pnand %p882_p0, %p1096_p3  ;;  %s887_s24 = scalar_lea.vmem %s886_s21, 256 }
  0x2c   : > { %p888_p4 = scmp.lt.s32.totalorder %s579_s10, %s886_s21  ;;  %p889_p5 = scmp.lt.s32.totalorder %s887_s24, %s881_s13 }
  0x2d   : > { %p884_p2 = pneg %p883_p1 }
  0x2e   : > { %p890_p6 = por %p889_p5, %p888_p4 }
  0x30   : > { %p891_p7 = pnand %p890_p6, %p884_p2 }
  0xfd   : > { %v442_v11 = vpop.f32.mrb[0].mxu0 }
  0xfe   : > { %v451_v12 = vsel %vm450_vm3, %v442_v11, -1e+09  ;;  %v788_v13 = vpop.f32.mrb[1].mxu0 }
  0xff   : > { %v453_v14 = vsel %vm452_vm4, %v451_v12, -inf }
 0x100   : > { %454 = vmax.xlane.f32.xlu0 %v453_v14 }
 0x18d   : > { %v455_v15 = vpop.xlane.xlu0 %454 }
 0x18e   : > { %v456_v16 = vsub.f32 %v451_v12, %v455_v15 }
 0x190   : > { %v457_v17 = vmul.f32 1.442695, %v456_v16 }
 0x192   : > { %877 = vpow2.f32 %v457_v17 }
 0x19c   : > { %v878_v18 = vpop.eup %877 }
 0x19d   : > { %v459_v19 = vsel %vm452_vm4, %v878_v18, 0.0 }
 0x19e   : > { %460 = vadd.xlane.f32.xlu0 %v459_v19 }
 0x22b   : > { %v461_v21 = vpop.xlane.xlu0 %460 }
 0x22c   : > { %879 = vrcp.f32 %v461_v21 }
 0x236   : > { %v880_v22 = vpop.eup %879 }
 0x237   : > { %v464_v23 = vmul.f32 %v880_v22, %v878_v18 }
 0x239   : > { %792 = vmatmul.mubr.msk.f32.vlgmr.msra.gmra.mrb[0].mxu1 %vm452_vm4, %v464_v23  ;;  %465 = vst.msk [vmem:[%s332_s16] sm:$0xff] %vm452_vm4, %v464_v23 }
 0x23a   : > { %894 = shalt.err (!%p891_p7)
}
 0x23b   : > { %s895_s28 = scalar_lea.hbm %s1160_s9, 128  ;;  %s899_s17 = scalar_lea.hbm %s1247_s5, 1024 }
 0x23c   : > { %p896_p9 = scmp.ne.s32.totalorder %s1160_s9, %s895_s28  ;;  %p900_p12 = scmp.lt.u32.totalorder %s1160_s9, %s1247_s5 }
 0x23d   : > { %p901_p13 = scmp.lt.u32.totalorder %s899_s17, %s895_s28  ;;  %p903_p1 = scmp.lt.u32.totalorder %s895_s28, %s1160_s9 }
 0x23e   : > { %p897_p10 = pnand %p896_p9, %p1096_p3 }
 0x23f   : > { %p902_p0 = por %p901_p13, %p900_p12 }
 0x240   : > { %p898_p11 = pneg %p897_p10 }
 0x241   : > { %p904_p2 = por %p903_p1, %p902_p0 }
 0x243   : > { %p905_p4 = pnand %p904_p2, %p898_p11 }
 0x245   : > { %908 = shalt.err (!%p905_p4)
}
 0x246   : > { %798 = dma.vmem_to_hbm [thread:$0]  (%p1096_p3), %s579_s10, 128, %s1160_s9, %s546_s12  }
 0x247   : > { %s325_s13 = scalar_lea.vmem [#allocation2], %s758_s15  ;;  %s1187_s29 = scalar_lea.hbm %s1246_s4, %s772_s27 }
 0x248   : > { %s562_s22 = sshll.u32 %s325_s13, 4  ;;  %s541_s28 = scalar_lea.sflag [#allocation3], %s1143_s14  ;;  %s1189_s22 = int_to_ptr.vmem [resolvable:$true] %s562_s22 }
 0x249   : > { %s909_s9 = scalar_lea.vmem %s1189_s22, 128  ;;  %s1014_s15 = smov [#allocation2]  }
 0x24a   : > { %p910_p5 = scmp.ne.s32.totalorder %s1189_s22, %s909_s9  ;;  %s913_s26 = sshll.u32 %s1014_s15, 4  ;;  %s914_s26 = int_to_ptr.vmem [resolvable:$false] %s913_s26 }
 0x24b   : > { %s915_s27 = scalar_lea.vmem %s914_s26, 256  ;;  %p916_p9 = scmp.lt.s32.totalorder %s1189_s22, %s914_s26 }
 0x24c   : > { %p911_p6 = pnand %p910_p5, %p1096_p3  ;;  %p917_p10 = scmp.lt.s32.totalorder %s915_s27, %s909_s9 }
 0x24e   : > { %p912_p7 = pneg %p911_p6  ;;  %p918_p11 = por %p917_p10, %p916_p9 }
 0x250   : > { %p919_p12 = pnand %p918_p11, %p912_p7 }
 0x30c   : > { %v535_v24 = vpop.f32.mrb[0].mxu1 }
 0x30d   : > { %539 = vst.msk [vmem:[%s325_s13] sm:$0xff] %vm372_vm1, %v535_v24  ;;  %v793_v25 = vpop.f32.mrb[1].mxu1 }
 0x30e   : > { %922 = shalt.err (!%p919_p12)
}
 0x30f   : > { %s923_s14 = scalar_lea.hbm %s1187_s29, 128  ;;  %s927_s16 = scalar_lea.hbm %s1246_s4, 1024 }
 0x310   : > { %p924_p13 = scmp.ne.s32.totalorder %s1187_s29, %s923_s14  ;;  %p928_p2 = scmp.lt.u32.totalorder %s1187_s29, %s1246_s4 }
 0x311   : > { %p929_p4 = scmp.lt.u32.totalorder %s927_s16, %s923_s14  ;;  %p931_p6 = scmp.lt.u32.totalorder %s923_s14, %s1187_s29 }
 0x312   : > { %p925_p0 = pnand %p924_p13, %p1096_p3 }
 0x313   : > { %p930_p5 = por %p929_p4, %p928_p2 }
 0x314   : > { %p926_p1 = pneg %p925_p0 }
 0x315   : > { %p932_p7 = por %p931_p6, %p930_p5 }
 0x317   : > { %p933_p9 = pnand %p932_p7, %p926_p1 }
 0x319   : > { %936 = shalt.err (!%p933_p9)
}
 0x31a   : > { %797 = dma.vmem_to_hbm [thread:$0]  (%p1096_p3), %s1189_s22, 128, %s1187_s29, %s541_s28  }
 0x31b PF: > { %p808_p10 = scmp.ge.s32.totalorder %s1007_s25, 2  ;;  %s590_s8 = sand.u32 1, %s979_s18  }
 0x31c   : > { %s591_s13 = scalar_lea.sflag [#allocation3], %s590_s8 }
 0x31d   : > { %p802_p11 = pnand %p808_p10, %p1105_p8 }
 0x31f   : > { %970 = dma.done.wait (!%p802_p11), %s591_s13, 128  }
 0x320   : > { %972 = vsyncadd (!%p802_p11), %s591_s13, 4294967168  ;;  %s600_s21 = scalar_lea.sflag [#allocation5], %s590_s8 }
 0x321   : > { %974 = dma.done.wait (!%p802_p11), %s600_s21, 128  }
 0x322   : > { %976 = vsyncadd (!%p802_p11), %s600_s21, 4294967168  ;;  %s22_s25 = sadd.s32 1, %s1007_s25   ;;  %s1256_s22 = sld [smem:[#allocation8_spill]] }
 0x323   : > { %p19_p12 = scmp.ge.s32.totalorder %s22_s25, 10   ;;  %s1257_s6 = sld [smem:[#allocation9_spill]] }
 0x324   : > { %s1258_s24 = sld [smem:[#allocation10_spill]]  ;;  %s1259_s18 = smov %s983_s19 }
 0x325   : > { %s1260_s19 = smov %s987_s20  ;;  %s1261_s20 = smov %s1114_s11 }
 0x326   : > { %s1262_s21 = smov %s999_s23  ;;  %21 = sbr.rel (!%p19_p12) target bundleno = 7 (0x7), region = 97 }
 0x329   : > { %s1263_s23 = smov %s1257_s6 }
 0x32d   :  { %605 = vsyncpa [#allocation3], 1 }
 0x32e   :  { %607 = vsyncpa [#allocation3 + $0x1], 1 }
 0x32f   :  { %608 = vsyncpa [#allocation5], 1 }
 0x330   :  { %610 = vsyncpa [#allocation5 + $0x1], 1 }

</bundles_post_ra>
